<compile_context>
chip_gen: v5e
topology: v5e:2x2
jax: 0.10.0
libtpu: 0.0.40
codegen_flags: <defaults>
</compile_context>

<pallas_src>
import jax
import jax.numpy as jnp
from jax.experimental import pallas as pl
from jax.experimental.pallas import tpu as pltpu


def dqn_kernel(x_ref, w1_ref, b1_ref, w2_ref, b2_ref, w3_ref, b3_ref, out_ref):
    # x arrives unpadded as f32; cast to the MXU compute dtype in-register.
    x = x_ref[...].astype(w1_ref.dtype)

    # fc1 + ReLU  (MXU matmul, f32 accumulate, f32 epilogue)
    h1 = jnp.dot(x, w1_ref[...], preferred_element_type=jnp.float32)
    h1 = jnp.maximum(h1 + b1_ref[...], 0.0)
    # (dropout1 == identity in eval mode)

    # fc2 + ReLU
    h2 = jnp.dot(h1.astype(w2_ref.dtype), w2_ref[...],
                 preferred_element_type=jnp.float32)
    h2 = jnp.maximum(h2 + b2_ref[...], 0.0)
    # (dropout2 == identity in eval mode)

    # fc3
    out = jnp.dot(h2.astype(w3_ref.dtype), w3_ref[...],
                  preferred_element_type=jnp.float32)
    out_ref[...] = (out + b3_ref[...]).astype(out_ref.dtype)


def _round_up(n, m):
    return ((n + m - 1) // m) * m


def prepare_params(params, compute_dtype=jnp.bfloat16):
    """One-time parameter prep (hoisted out of the per-call hot path).

    Weights -> MXU compute dtype, biases -> f32 row vectors (1, H) for the
    f32 epilogue.  Cache the result across forward calls.
    """
    def as_row(b):
        return jnp.asarray(b, jnp.float32).reshape(1, -1)

    return {
        "w1": jnp.asarray(params["w1"], compute_dtype),
        "w2": jnp.asarray(params["w2"], compute_dtype),
        "w3": jnp.asarray(params["w3"], compute_dtype),
        "b1": as_row(params["b1"]),
        "b2": as_row(params["b2"]),
        "b3": as_row(params["b3"]),
    }


def dqn_forward(x, prepared, *, batch_tile=1024):
    """x: (B, state_size) float32.  prepared: output of prepare_params()."""
    w1, b1 = prepared["w1"], prepared["b1"]
    w2, b2 = prepared["w2"], prepared["b2"]
    w3, b3 = prepared["w3"], prepared["b3"]

    x = jnp.asarray(x, jnp.float32)
    B, S = x.shape
    A = w3.shape[1]

    # Batch tile: multiple of 8 (f32 sublanes).  For B >= 16 pick a tile that
    # yields at least 2 grid steps so the "parallel" batch axis can actually
    # shard across v7x's two TensorCores; tiny batches use one minimal tile.
    if B >= 16:
        TB = min(batch_tile, _round_up(pl.cdiv(B, 2), 8))
    else:
        TB = _round_up(max(B, 1), 8)
    grid = (pl.cdiv(B, TB),)

    # Weights/biases: one full block with a constant index_map -> DMA'd once,
    # resident in VMEM across all grid steps.
    const = lambda arr: pl.BlockSpec(arr.shape, lambda i: (0, 0))

    return pl.pallas_call(
        dqn_kernel,
        out_shape=jax.ShapeDtypeStruct((B, A), jnp.float32),
        grid_spec=pltpu.PrefetchScalarGridSpec(
            num_scalar_prefetch=0,
            grid=grid,
            in_specs=[
                pl.BlockSpec((TB, S), lambda i: (i, 0)),  # x: tiled over batch
                const(w1), const(b1),
                const(w2), const(b2),
                const(w3), const(b3),
            ],
            out_specs=pl.BlockSpec((TB, A), lambda i: (i, 0)),
        ),
        compiler_params=pltpu.CompilerParams(
            dimension_semantics=("parallel",)),   # lets v7x use both TCs
    )(x, w1, b1, w2, b2, w3, b3)


def init_params(key, state_size, action_size):
    """Deterministic init mimicking PyTorch nn.Linear (U(-1/sqrt(fan_in), +))."""
    def linear(key, fan_in, fan_out):
        kw, kb = jax.random.split(key)
        bound = 1.0 / jnp.sqrt(jnp.float32(fan_in))
        # Stored as (in, out) so the kernel does x @ W.
        w = jax.random.uniform(kw, (fan_in, fan_out), jnp.float32, -bound, bound)
        b = jax.random.uniform(kb, (1, fan_out), jnp.float32, -bound, bound)
        return w, b

    k1, k2, k3 = jax.random.split(key, 3)
    w1, b1 = linear(k1, state_size, 128)
    w2, b2 = linear(k2, 128, 64)
    w3, b3 = linear(k3, 64, action_size)
    return {"w1": w1, "b1": b1, "w2": w2, "b2": b2, "w3": w3, "b3": b3}


def dqn_reference(x, params):
    h1 = jnp.maximum(x @ params["w1"] + params["b1"], 0.0)
    h2 = jnp.maximum(h1 @ params["w2"] + params["b2"], 0.0)
    return h2 @ params["w3"] + params["b3"]


if __name__ == "__main__":
    key = jax.random.PRNGKey(0)
    k_params, k_x, k_x2 = jax.random.split(key, 3)

    batch = 2
    state_size = 16
    action_size = 4

    params = init_params(k_params, state_size, action_size)
    x = jax.random.normal(k_x, (batch, state_size), jnp.float32)
    ref = dqn_reference(x, params)

    # Exact (f32) path: tight tolerance vs. the pure-JAX reference.
    prepared_f32 = prepare_params(params, compute_dtype=jnp.float32)
    out_f32 = jax.block_until_ready(dqn_forward(x, prepared_f32))
    assert out_f32.shape == (batch, action_size)
    assert jnp.allclose(out_f32, ref, atol=1e-4, rtol=1e-4), "f32 mismatch"

    # bf16-MXU / f32-accumulate path (the recommended perf configuration).
    prepared_bf16 = prepare_params(params, compute_dtype=jnp.bfloat16)
    out_bf16 = jax.block_until_ready(dqn_forward(x, prepared_bf16))
    assert out_bf16.shape == (batch, action_size)
    assert jnp.allclose(out_bf16, ref, atol=5e-2, rtol=5e-2), "bf16 mismatch"

    # Multi-step grid + ragged-tail check: B=300 -> 2 grid steps of 152 rows;
    # the tail block's out-of-bounds rows are clipped by Pallas, never stored.
    big_batch = 300
    xb = jax.random.normal(k_x2, (big_batch, state_size), jnp.float32)
    refb = dqn_reference(xb, params)
    outb = jax.block_until_ready(dqn_forward(xb, prepared_bf16))
    assert outb.shape == (big_batch, action_size)
    assert jnp.allclose(outb, refb, atol=5e-2, rtol=5e-2), "tail-tile mismatch"

    print("KERNEL_OK")
</pallas_src>

<mosaic_0001>
module attributes {stable_mosaic.version = 11 : i64} {
  func.func @dqn_kernel(%arg0: i32, %arg1: memref<8x16xf32, #tpu.memory_space<vmem>>, %arg2: memref<16x128xf32, #tpu.memory_space<vmem>>, %arg3: memref<1x128xf32, #tpu.memory_space<vmem>>, %arg4: memref<128x64xf32, #tpu.memory_space<vmem>>, %arg5: memref<1x64xf32, #tpu.memory_space<vmem>>, %arg6: memref<64x4xf32, #tpu.memory_space<vmem>>, %arg7: memref<1x4xf32, #tpu.memory_space<vmem>>, %arg8: memref<8x4xf32, #tpu.memory_space<vmem>>) attributes {dimension_semantics = [#tpu.dimension_semantics<parallel>], iteration_bounds = array<i64: 1>, scalar_prefetch = 0 : i64, scratch_operands = 0 : i64, tpu.core_type = #tpu.core_type<tc>, window_params = [{transform_indices = @transform_0, window_bounds = array<i64: 8, 16>}, {pipeline_mode = #tpu.pipeline_mode<synchronous>, transform_indices = @transform_1, window_bounds = array<i64: 16, 128>}, {pipeline_mode = #tpu.pipeline_mode<synchronous>, transform_indices = @transform_2, window_bounds = array<i64: 1, 128>}, {pipeline_mode = #tpu.pipeline_mode<synchronous>, transform_indices = @transform_3, window_bounds = array<i64: 128, 64>}, {pipeline_mode = #tpu.pipeline_mode<synchronous>, transform_indices = @transform_4, window_bounds = array<i64: 1, 64>}, {pipeline_mode = #tpu.pipeline_mode<synchronous>, transform_indices = @transform_5, window_bounds = array<i64: 64, 4>}, {pipeline_mode = #tpu.pipeline_mode<synchronous>, transform_indices = @transform_6, window_bounds = array<i64: 1, 4>}, {transform_indices = @transform_7, window_bounds = array<i64: 8, 4>}]} {
    %c0 = arith.constant 0 : index
    %c0_0 = arith.constant 0 : index
    %0 = vector.load %arg1[%c0, %c0_0] : memref<8x16xf32, #tpu.memory_space<vmem>>, vector<8x16xf32>
    %c0_1 = arith.constant 0 : index
    %c0_2 = arith.constant 0 : index
    %1 = vector.load %arg2[%c0_1, %c0_2] : memref<16x128xf32, #tpu.memory_space<vmem>>, vector<16x128xf32>
    %cst = arith.constant dense<0.000000e+00> : vector<8x128xf32>
    %2 = tpu.matmul %0, %1, %cst {dimension_numbers = #tpu.dot_dimension_numbers<[1], [0], [0], [1], [0, 0, 1, 1], [], []>} : vector<8x16xf32>, vector<16x128xf32>, vector<8x128xf32> -> vector<8x128xf32>
    %c0_3 = arith.constant 0 : index
    %c0_4 = arith.constant 0 : index
    %3 = vector.load %arg3[%c0_3, %c0_4] : memref<1x128xf32, #tpu.memory_space<vmem>>, vector<1x128xf32>
    %4 = vector.broadcast %3 : vector<1x128xf32> to vector<8x128xf32>
    %5 = arith.addf %2, %4 : vector<8x128xf32>
    %cst_5 = arith.constant 0.000000e+00 : f32
    %6 = vector.broadcast %cst_5 : f32 to vector<8x128xf32>
    %7 = arith.maximumf %5, %6 : vector<8x128xf32>
    %c0_6 = arith.constant 0 : index
    %c0_7 = arith.constant 0 : index
    %8 = vector.load %arg4[%c0_6, %c0_7] : memref<128x64xf32, #tpu.memory_space<vmem>>, vector<128x64xf32>
    %cst_8 = arith.constant dense<0.000000e+00> : vector<8x64xf32>
    %9 = tpu.matmul %7, %8, %cst_8 {dimension_numbers = #tpu.dot_dimension_numbers<[1], [0], [0], [1], [0, 0, 1, 1], [], []>} : vector<8x128xf32>, vector<128x64xf32>, vector<8x64xf32> -> vector<8x64xf32>
    %c0_9 = arith.constant 0 : index
    %c0_10 = arith.constant 0 : index
    %10 = vector.load %arg5[%c0_9, %c0_10] : memref<1x64xf32, #tpu.memory_space<vmem>>, vector<1x64xf32>
    %11 = vector.broadcast %10 : vector<1x64xf32> to vector<8x64xf32>
    %12 = arith.addf %9, %11 : vector<8x64xf32>
    %cst_11 = arith.constant 0.000000e+00 : f32
    %13 = vector.broadcast %cst_11 : f32 to vector<8x64xf32>
    %14 = arith.maximumf %12, %13 : vector<8x64xf32>
    %c0_12 = arith.constant 0 : index
    %c0_13 = arith.constant 0 : index
    %15 = vector.load %arg6[%c0_12, %c0_13] : memref<64x4xf32, #tpu.memory_space<vmem>>, vector<64x4xf32>
    %cst_14 = arith.constant dense<0.000000e+00> : vector<8x4xf32>
    %16 = tpu.matmul %14, %15, %cst_14 {dimension_numbers = #tpu.dot_dimension_numbers<[1], [0], [0], [1], [0, 0, 1, 1], [], []>} : vector<8x64xf32>, vector<64x4xf32>, vector<8x4xf32> -> vector<8x4xf32>
    %c0_15 = arith.constant 0 : index
    %c0_16 = arith.constant 0 : index
    %17 = vector.load %arg7[%c0_15, %c0_16] : memref<1x4xf32, #tpu.memory_space<vmem>>, vector<1x4xf32>
    %18 = vector.broadcast %17 : vector<1x4xf32> to vector<8x4xf32>
    %19 = arith.addf %16, %18 : vector<8x4xf32>
    %c0_17 = arith.constant 0 : index
    %c0_18 = arith.constant 0 : index
    %20 = vector.load %arg8[%c0_17, %c0_18] : memref<8x4xf32, #tpu.memory_space<vmem>>, vector<8x4xf32>
    tpu.vector_store %arg8[%c0_17, %c0_18], %19 {strides = array<i32>} : memref<8x4xf32, #tpu.memory_space<vmem>>, vector<8x4xf32>,
    return
  }
  func.func @transform_0(%arg0: i32) -> (i32, i32) {
    %c0_i32 = arith.constant 0 : i32
    %c0_i32_0 = arith.constant 0 : i32
    return %arg0, %c0_i32 : i32, i32
  }
  func.func @transform_1(%arg0: i32) -> (i32, i32) {
    %c0_i32 = arith.constant 0 : i32
    %c0_i32_0 = arith.constant 0 : i32
    %c0_i32_1 = arith.constant 0 : i32
    return %c0_i32, %c0_i32_0 : i32, i32
  }
  func.func @transform_2(%arg0: i32) -> (i32, i32) {
    %c0_i32 = arith.constant 0 : i32
    %c0_i32_0 = arith.constant 0 : i32
    %c0_i32_1 = arith.constant 0 : i32
    return %c0_i32, %c0_i32_0 : i32, i32
  }
  func.func @transform_3(%arg0: i32) -> (i32, i32) {
    %c0_i32 = arith.constant 0 : i32
    %c0_i32_0 = arith.constant 0 : i32
    %c0_i32_1 = arith.constant 0 : i32
    return %c0_i32, %c0_i32_0 : i32, i32
  }
  func.func @transform_4(%arg0: i32) -> (i32, i32) {
    %c0_i32 = arith.constant 0 : i32
    %c0_i32_0 = arith.constant 0 : i32
    %c0_i32_1 = arith.constant 0 : i32
    return %c0_i32, %c0_i32_0 : i32, i32
  }
  func.func @transform_5(%arg0: i32) -> (i32, i32) {
    %c0_i32 = arith.constant 0 : i32
    %c0_i32_0 = arith.constant 0 : i32
    %c0_i32_1 = arith.constant 0 : i32
    return %c0_i32, %c0_i32_0 : i32, i32
  }
  func.func @transform_6(%arg0: i32) -> (i32, i32) {
    %c0_i32 = arith.constant 0 : i32
    %c0_i32_0 = arith.constant 0 : i32
    %c0_i32_1 = arith.constant 0 : i32
    return %c0_i32, %c0_i32_0 : i32, i32
  }
  func.func @transform_7(%arg0: i32) -> (i32, i32) {
    %c0_i32 = arith.constant 0 : i32
    %c0_i32_0 = arith.constant 0 : i32
    return %arg0, %c0_i32 : i32, i32
  }
}

</mosaic_0001>

<bundles_post_ra>
// kernel: tpu_custom_call.1
= control target key start
LH: loop header
LB: loop body
LE: loop exit
PB: predicated region body
PF: predicated region fallthrough
CT: control target
= control target key end

     0   :  { %12 = vsyncpa [#allocation3], 0  ;;  %vm34_vm0 = vcmask 130048   ;;  %vm112_vm1 = vcmask 523264   ;;  %vm136_vm2 = vcmask 31744   ;;  %s326_s0 = inlined_call_operand.vmem [shape: f32[2,16], index: 0, kind: input, shape index: {}]   ;;  %s327_s1 = inlined_call_operand.vmem [shape: f32[16,128], index: 1, kind: input, shape index: {}]   ;;  %s328_s2 = inlined_call_operand.vmem [shape: f32[1,128], index: 2, kind: input, shape index: {}]   ;;  %s329_s3 = inlined_call_operand.vmem [shape: f32[128,64], index: 3, kind: input, shape index: {}]   ;;  %s330_s4 = inlined_call_operand.vmem [shape: f32[1,64], index: 4, kind: input, shape index: {}]   ;;  %s331_s5 = inlined_call_operand.vmem [shape: f32[64,4], index: 5, kind: input, shape index: {}]   ;;  %s332_s6 = inlined_call_operand.vmem [shape: f32[1,4], index: 6, kind: input, shape index: {}]   ;;  %s333_s7 = inlined_call_operand.hbm [shape: f32[2,4], index: 7, kind: output, shape index: {}]  }
   0x1   :  { %v29_v0 = vld [vmem:[%s327_s1 + $0x8] sm:$0xff]  ;;  %v28_v1 = vld [vmem:[%s327_s1] sm:$0xff]  ;;  %v74_v3 = vld [vmem:[%s329_s3 + $0x78] sm:$0xff] }
   0x2   :  { %52 = vmatpush.msra.mxu0 %v29_v0  ;;  %v27_v2 = vld [vmem:[%s326_s0] sm:$0xff]  ;;  %v73_v4 = vld [vmem:[%s329_s3 + $0x70] sm:$0xff]  ;;  %79 = vmatpush.msra.mxu1 %v74_v3  ;;  %v72_v5 = vld [vmem:[%s329_s3 + $0x68] sm:$0xff] }
   0x3   :  { %v71_v6 = vld [vmem:[%s329_s3 + $0x60] sm:$0xff]  ;;  %v70_v7 = vld [vmem:[%s329_s3 + $0x58] sm:$0xff]  ;;  %v69_v8 = vld [vmem:[%s329_s3 + $0x50] sm:$0xff] }
   0x4   :  { %53 = vmatpush.msra.mxu0 %v28_v1  ;;  %80 = vmatpush.msra.mxu1 %v73_v4  ;;  %v68_v9 = vld [vmem:[%s329_s3 + $0x48] sm:$0xff]  ;;  %v67_v10 = vld [vmem:[%s329_s3 + $0x40] sm:$0xff]  ;;  %v66_v11 = vld [vmem:[%s329_s3 + $0x38] sm:$0xff] }
   0x5   :  { %156 = vmatmul.msk.f32.vlgmr.msra.gmra.mxu0 %vm34_vm0, %v27_v2  ;;  %v65_v12 = vld [vmem:[%s329_s3 + $0x30] sm:$0xff]  ;;  %v64_v13 = vld [vmem:[%s329_s3 + $0x28] sm:$0xff]  ;;  %v63_v14 = vld [vmem:[%s329_s3 + $0x20] sm:$0xff] }
   0x6   :  { %81 = vmatpush.msra.mxu1 %v72_v5  ;;  %v62_v15 = vld [vmem:[%s329_s3 + $0x18] sm:$0xff]  ;;  %v61_v16 = vld [vmem:[%s329_s3 + $0x10] sm:$0xff]  ;;  %v60_v17 = vld [vmem:[%s329_s3 + $0x8] sm:$0xff] }
   0x7   :  { %v59_v18 = vld [vmem:[%s329_s3] sm:$0xff]  ;;  %v107_v19 = vld [vmem:[%s331_s5 + $0x38] sm:$0xff]  ;;  %v106_v20 = vld [vmem:[%s331_s5 + $0x30] sm:$0xff] }
   0x8   :  { %82 = vmatpush.msra.mxu1 %v71_v6  ;;  %124 = vmatpush.msra.mxu2 %v107_v19  ;;  %v105_v21 = vld [vmem:[%s331_s5 + $0x28] sm:$0xff]  ;;  %v104_v22 = vld [vmem:[%s331_s5 + $0x20] sm:$0xff]  ;;  %v103_v23 = vld [vmem:[%s331_s5 + $0x18] sm:$0xff] }
   0x9   :  { %v161_v24 = vld [vmem:[%s328_s2] ss:$0 sm:$0xff]  ;;  %v102_v28 = vld [vmem:[%s331_s5 + $0x10] sm:$0xff]  ;;  %v101_v29 = vld [vmem:[%s331_s5 + $0x8] sm:$0xff] }
   0xa   :  { %83 = vmatpush.msra.mxu1 %v70_v7  ;;  %125 = vmatpush.msra.mxu2 %v106_v20  ;;  %v100_v30 = vld [vmem:[%s331_s5] sm:$0xff] }
   0xb   :  { %v162_v31 = vld [vmem:[%s330_s4] ss:$0 sm:$0xff] }
   0xc   :  { %84 = vmatpush.msra.mxu1 %v69_v8  ;;  %126 = vmatpush.msra.mxu2 %v105_v21  ;;  %v163_v35 = vld [vmem:[%s332_s6] ss:$0 sm:$0xff] }
   0xe   :  { %85 = vmatpush.msra.mxu1 %v68_v9  ;;  %127 = vmatpush.msra.mxu2 %v104_v22 }
  0x10   :  { %86 = vmatpush.msra.mxu1 %v67_v10  ;;  %128 = vmatpush.msra.mxu2 %v103_v23 }
  0x12   :  { %87 = vmatpush.msra.mxu1 %v66_v11  ;;  %129 = vmatpush.msra.mxu2 %v102_v28 }
  0x14   :  { %88 = vmatpush.msra.mxu1 %v65_v12  ;;  %130 = vmatpush.msra.mxu2 %v101_v29 }
  0x16   :  { %89 = vmatpush.msra.mxu1 %v64_v13  ;;  %131 = vmatpush.msra.mxu2 %v100_v30 }
  0x18   :  { %90 = vmatpush.msra.mxu1 %v63_v14 }
  0x1a   :  { %91 = vmatpush.msra.mxu1 %v62_v15 }
  0x1c   :  { %92 = vmatpush.msra.mxu1 %v61_v16 }
  0x1e   :  { %93 = vmatpush.msra.mxu1 %v60_v17 }
  0x20   :  { %94 = vmatpush.msra.mxu1 %v59_v18 }
  0x82   :  { %v55_v25 = vpop.f32.mrf.mxu0 }
  0x83   :  { %v56_v26 = vadd.f32 %v161_v24, %v55_v25 }
  0x85   :  { %v58_v27 = vmax.f32 %v56_v26, 0.0 }
  0x87   :  { %95 = vmatmul.f32.vlgmr.msra.gmra.mxu1 %v58_v27 }
 0x104   :  { %v96_v32 = vpop.f32.mrf.mxu1 }
 0x105   :  { %v97_v33 = vadd.f32 %v162_v31, %v96_v32 }
 0x107   :  { %v99_v34 = vmax.f32 %v97_v33, 0.0 }
 0x109   :  { %157 = vmatmul.msk.f32.vlgmr.msra.gmra.mxu2 %vm112_vm1, %v99_v34 }
 0x18c   :  { %v133_v36 = vpop.f32.mrf.mxu2 }
 0x18d   :  { %v134_v37 = vadd.f32 %v163_v35, %v133_v36 }
 0x18f   :  { %137 = vst.msk [vmem:[#allocation2] sm:$0xff] %vm136_vm2, %v134_v37 }
 0x190   :  { %141 = vsyncadd [#allocation3], 96  ;;  %s144_s10 = sshll.u32 %s333_s7, 4  ;;  %s190_s11 = smov [#allocation2]   ;;  %s145_s10 = int_to_ptr.hbm [resolvable:$true] %s144_s10 }
 0x191   :  { %s142_s4 = sshll.u32 %s190_s11, 4  ;;  %s191_s12 = smov 32   ;;  %s143_s4 = int_to_ptr.vmem [resolvable:$true] %s142_s4 }
 0x192   :  { %s192_s1 = smov 2  }
 0x193   :  { %150 = dma.vmem_to_hbm [thread:$0]  %s143_s4, 32, %s145_s10, [#allocation3], %s191_s12, %s191_s12, %s192_s1  }
 0x194   :  { %188 = dma.done.wait [#allocation3], 128  }
 0x195   :  { %189 = vsyncadd [#allocation3], 4294967168 }
 0x196   :  { %155 = vsyncpa [#allocation3], 1 }

</bundles_post_ra>
